<compile_context>
chip_gen: v7x
topology: tpu7x:2x2x1
jax: 0.10.0
libtpu: 0.0.40
codegen_flags: <defaults>
</compile_context>

<pallas_src>
import jax
import jax.numpy as jnp
from jax.experimental import pallas as pl
from jax.experimental.pallas import tpu as pltpu

_EPS = 1e-5  # nn.BatchNorm2d default eps


def _vgg_block_kernel(x_ref, params_ref, o_ref):
    # x_ref:      (N, H, W)      f32 VMEM (full array, no grid)
    # params_ref: (11,)          f32 SMEM: [w00..w22 row-major, gamma, beta]
    # o_ref:      (N, H-2, W-2)  f32 VMEM
    x = x_ref[...]
    n, h, w = x.shape
    ho, wo = h - 2, w - 2

    # Hoist all 11 SMEM scalar reads out of the MAC loop.
    wk = [params_ref[k] for k in range(9)]
    gamma = params_ref[9]
    beta = params_ref[10]

    # --- Conv2d(1, 1, 3), stride 1, valid padding -------------------------
    # The three kh-shifted (sublane-direction) operands are materialized once
    # each; kw shifts are lane slices of those (wo=14 fits in one vreg row).
    acc = jnp.zeros((n, ho, wo), jnp.float32)
    for kh in range(3):
        x_kh = x[:, kh:kh + ho, :]
        for kw in range(3):
            acc = acc + x_kh[:, :, kw:kw + wo] * wk[kh * 3 + kw]
    # conv bias intentionally omitted: exactly cancelled by training-mode BN
    # mean subtraction and has no effect on the variance.

    # --- BatchNorm2d(1), training-mode batch stats over (N, Ho, Wo) --------
    # Two-pass variance: acc is fully resident, so this is nearly free and
    # avoids the E[x^2] - E[x]^2 cancellation of the single-pass form.
    inv_count = 1.0 / float(n * ho * wo)
    mean = jnp.sum(acc) * inv_count
    centered = acc - mean
    var = jnp.sum(centered * centered) * inv_count
    scale = gamma * jax.lax.rsqrt(var + _EPS)

    # --- fused affine + ReLU ----------------------------------------------
    o_ref[...] = jnp.maximum(centered * scale + beta, 0.0)


def vgg16_block(x_nchw, conv_w, conv_b, bn_gamma, bn_beta):
    """x_nchw: (N, 1, H, W) f32. Returns (N, 1, H-2, W-2) f32.

    conv_b is accepted for API parity but unused: a constant bias added before
    training-mode BatchNorm has no effect on the forward output.
    """
    del conv_b
    n, c, h, w = x_nchw.shape
    assert c == 1, "VGG16Block uses a single input/output channel"
    ho, wo = h - 2, w - 2

    # Squeeze the size-1 channel dim (metadata-only reshape, no copy).
    x = x_nchw.reshape(n, h, w)

    # Pack conv weights + BN affine params into one flat SMEM operand.
    params = jnp.concatenate(
        [conv_w.reshape(9).astype(jnp.float32),
         bn_gamma.reshape(1).astype(jnp.float32),
         bn_beta.reshape(1).astype(jnp.float32)])

    out = pl.pallas_call(
        _vgg_block_kernel,
        out_shape=jax.ShapeDtypeStruct((n, ho, wo), jnp.float32),
        in_specs=[
            pl.BlockSpec(memory_space=pltpu.VMEM),   # x, full array
            pl.BlockSpec(memory_space=pltpu.SMEM),   # packed scalars (11,)
        ],
        out_specs=pl.BlockSpec(memory_space=pltpu.VMEM),
    )(x, params)

    # Restore NCHW (size-1 channel insert is metadata-only).
    return out[:, None, :, :]


def _reference_forward(x_nchw, conv_w, conv_b, bn_gamma, bn_beta):
    """Pure-JAX reference mirroring the PyTorch module op-by-op."""
    x = x_nchw[:, 0, :, :]
    n, h, w = x.shape
    ho, wo = h - 2, w - 2
    acc = jnp.zeros((n, ho, wo), jnp.float32)
    for kh in range(3):
        for kw in range(3):
            acc = acc + x[:, kh:kh + ho, kw:kw + wo] * conv_w[kh, kw]
    acc = acc + conv_b[0]
    mean = jnp.mean(acc)
    var = jnp.mean((acc - mean) ** 2)
    y = (acc - mean) * jax.lax.rsqrt(var + _EPS)
    y = y * bn_gamma[0] + bn_beta[0]
    return jnp.maximum(y, 0.0)[:, None, :, :]


if __name__ == "__main__":
    key = jax.random.PRNGKey(0)
    k_x, k_w, k_b = jax.random.split(key, 3)

    # Small shapes consistent with the module: batch=2, channels=1, spatial=16.
    N, C, H, W = 2, 1, 16, 16
    x = jax.random.normal(k_x, (N, C, H, W), dtype=jnp.float32)

    fan_in = 1 * 3 * 3
    bound = 1.0 / (fan_in ** 0.5)
    conv_w = jax.random.uniform(k_w, (3, 3), jnp.float32, -bound, bound)
    conv_b = jax.random.uniform(k_b, (1,), jnp.float32, -bound, bound)
    bn_gamma = jnp.ones((1,), jnp.float32)   # PyTorch BN default affine init
    bn_beta = jnp.zeros((1,), jnp.float32)

    out = vgg16_block(x, conv_w, conv_b, bn_gamma, bn_beta)
    jax.block_until_ready(out)
    assert out.shape == (N, 1, H - 2, W - 2)

    ref = _reference_forward(x, conv_w, conv_b, bn_gamma, bn_beta)
    max_err = float(jnp.max(jnp.abs(out - ref)))
    assert max_err < 1e-4, f"mismatch vs reference: max abs err {max_err}"
    print("KERNEL_OK")
</pallas_src>

<mosaic_0001>
module attributes {stable_mosaic.version = 11 : i64} {
  func.func @_vgg_block_kernel(%arg0: memref<2x16x16xf32, #tpu.memory_space<vmem>>, %arg1: memref<11xf32, #tpu.memory_space<smem>>, %arg2: memref<2x14x14xf32, #tpu.memory_space<vmem>>) attributes {dimension_semantics = [], scalar_prefetch = 0 : i64, scratch_operands = 0 : i64, tpu.core_type = #tpu.core_type<tc>} {
    %c0 = arith.constant 0 : index
    %c0_0 = arith.constant 0 : index
    %c0_1 = arith.constant 0 : index
    %0 = vector.load %arg0[%c0, %c0_0, %c0_1] : memref<2x16x16xf32, #tpu.memory_space<vmem>>, vector<2x16x16xf32>
    %c0_2 = arith.constant 0 : index
    %1 = memref.load %arg1[%c0_2] : memref<11xf32, #tpu.memory_space<smem>>
    %c1 = arith.constant 1 : index
    %2 = memref.load %arg1[%c1] : memref<11xf32, #tpu.memory_space<smem>>
    %c2 = arith.constant 2 : index
    %3 = memref.load %arg1[%c2] : memref<11xf32, #tpu.memory_space<smem>>
    %c3 = arith.constant 3 : index
    %4 = memref.load %arg1[%c3] : memref<11xf32, #tpu.memory_space<smem>>
    %c4 = arith.constant 4 : index
    %5 = memref.load %arg1[%c4] : memref<11xf32, #tpu.memory_space<smem>>
    %c5 = arith.constant 5 : index
    %6 = memref.load %arg1[%c5] : memref<11xf32, #tpu.memory_space<smem>>
    %c6 = arith.constant 6 : index
    %7 = memref.load %arg1[%c6] : memref<11xf32, #tpu.memory_space<smem>>
    %c7 = arith.constant 7 : index
    %8 = memref.load %arg1[%c7] : memref<11xf32, #tpu.memory_space<smem>>
    %c8 = arith.constant 8 : index
    %9 = memref.load %arg1[%c8] : memref<11xf32, #tpu.memory_space<smem>>
    %c9 = arith.constant 9 : index
    %10 = memref.load %arg1[%c9] : memref<11xf32, #tpu.memory_space<smem>>
    %c10 = arith.constant 10 : index
    %11 = memref.load %arg1[%c10] : memref<11xf32, #tpu.memory_space<smem>>
    %cst = arith.constant 0.000000e+00 : f32
    %12 = vector.broadcast %cst : f32 to vector<2x14x14xf32>
    %13 = vector.extract_strided_slice %0 {offsets = [0, 0, 0], sizes = [2, 14, 16], strides = [1, 1, 1]} : vector<2x16x16xf32> to vector<2x14x16xf32>
    %14 = vector.extract_strided_slice %13 {offsets = [0, 0, 0], sizes = [2, 14, 14], strides = [1, 1, 1]} : vector<2x14x16xf32> to vector<2x14x14xf32>
    %15 = vector.broadcast %1 : f32 to vector<2x14x14xf32>
    %16 = arith.mulf %14, %15 : vector<2x14x14xf32>
    %17 = arith.addf %12, %16 : vector<2x14x14xf32>
    %18 = vector.extract_strided_slice %13 {offsets = [0, 0, 1], sizes = [2, 14, 14], strides = [1, 1, 1]} : vector<2x14x16xf32> to vector<2x14x14xf32>
    %19 = vector.broadcast %2 : f32 to vector<2x14x14xf32>
    %20 = arith.mulf %18, %19 : vector<2x14x14xf32>
    %21 = arith.addf %17, %20 : vector<2x14x14xf32>
    %22 = vector.extract_strided_slice %13 {offsets = [0, 0, 2], sizes = [2, 14, 14], strides = [1, 1, 1]} : vector<2x14x16xf32> to vector<2x14x14xf32>
    %23 = vector.broadcast %3 : f32 to vector<2x14x14xf32>
    %24 = arith.mulf %22, %23 : vector<2x14x14xf32>
    %25 = arith.addf %21, %24 : vector<2x14x14xf32>
    %26 = vector.extract_strided_slice %0 {offsets = [0, 1, 0], sizes = [2, 14, 16], strides = [1, 1, 1]} : vector<2x16x16xf32> to vector<2x14x16xf32>
    %27 = vector.extract_strided_slice %26 {offsets = [0, 0, 0], sizes = [2, 14, 14], strides = [1, 1, 1]} : vector<2x14x16xf32> to vector<2x14x14xf32>
    %28 = vector.broadcast %4 : f32 to vector<2x14x14xf32>
    %29 = arith.mulf %27, %28 : vector<2x14x14xf32>
    %30 = arith.addf %25, %29 : vector<2x14x14xf32>
    %31 = vector.extract_strided_slice %26 {offsets = [0, 0, 1], sizes = [2, 14, 14], strides = [1, 1, 1]} : vector<2x14x16xf32> to vector<2x14x14xf32>
    %32 = vector.broadcast %5 : f32 to vector<2x14x14xf32>
    %33 = arith.mulf %31, %32 : vector<2x14x14xf32>
    %34 = arith.addf %30, %33 : vector<2x14x14xf32>
    %35 = vector.extract_strided_slice %26 {offsets = [0, 0, 2], sizes = [2, 14, 14], strides = [1, 1, 1]} : vector<2x14x16xf32> to vector<2x14x14xf32>
    %36 = vector.broadcast %6 : f32 to vector<2x14x14xf32>
    %37 = arith.mulf %35, %36 : vector<2x14x14xf32>
    %38 = arith.addf %34, %37 : vector<2x14x14xf32>
    %39 = vector.extract_strided_slice %0 {offsets = [0, 2, 0], sizes = [2, 14, 16], strides = [1, 1, 1]} : vector<2x16x16xf32> to vector<2x14x16xf32>
    %40 = vector.extract_strided_slice %39 {offsets = [0, 0, 0], sizes = [2, 14, 14], strides = [1, 1, 1]} : vector<2x14x16xf32> to vector<2x14x14xf32>
    %41 = vector.broadcast %7 : f32 to vector<2x14x14xf32>
    %42 = arith.mulf %40, %41 : vector<2x14x14xf32>
    %43 = arith.addf %38, %42 : vector<2x14x14xf32>
    %44 = vector.extract_strided_slice %39 {offsets = [0, 0, 1], sizes = [2, 14, 14], strides = [1, 1, 1]} : vector<2x14x16xf32> to vector<2x14x14xf32>
    %45 = vector.broadcast %8 : f32 to vector<2x14x14xf32>
    %46 = arith.mulf %44, %45 : vector<2x14x14xf32>
    %47 = arith.addf %43, %46 : vector<2x14x14xf32>
    %48 = vector.extract_strided_slice %39 {offsets = [0, 0, 2], sizes = [2, 14, 14], strides = [1, 1, 1]} : vector<2x14x16xf32> to vector<2x14x14xf32>
    %49 = vector.broadcast %9 : f32 to vector<2x14x14xf32>
    %50 = arith.mulf %48, %49 : vector<2x14x14xf32>
    %51 = arith.addf %47, %50 : vector<2x14x14xf32>
    %52 = vector.shape_cast %51 : vector<2x14x14xf32> to vector<1x2x14x14xf32>
    %cst_3 = arith.constant dense<0.000000e+00> : vector<1xf32>
    %53 = vector.multi_reduction <add>, %52, %cst_3 [1, 2, 3] : vector<1x2x14x14xf32> to vector<1xf32>
    %54 = vector.shape_cast %53 : vector<1xf32> to vector<1x1x1x1xf32>
    %55 = vector.extract %54[0, 0, 0, 0] : f32 from vector<1x1x1x1xf32>
    %cst_4 = arith.constant 0.00255102036 : f32
    %56 = arith.mulf %55, %cst_4 : f32
    %57 = vector.broadcast %56 : f32 to vector<2x14x14xf32>
    %58 = arith.subf %51, %57 : vector<2x14x14xf32>
    %59 = arith.mulf %58, %58 : vector<2x14x14xf32>
    %60 = vector.shape_cast %59 : vector<2x14x14xf32> to vector<1x2x14x14xf32>
    %cst_5 = arith.constant dense<0.000000e+00> : vector<1xf32>
    %61 = vector.multi_reduction <add>, %60, %cst_5 [1, 2, 3] : vector<1x2x14x14xf32> to vector<1xf32>
    %62 = vector.shape_cast %61 : vector<1xf32> to vector<1x1x1x1xf32>
    %63 = vector.extract %62[0, 0, 0, 0] : f32 from vector<1x1x1x1xf32>
    %cst_6 = arith.constant 0.00255102036 : f32
    %64 = arith.mulf %63, %cst_6 : f32
    %cst_7 = arith.constant 9.99999974E-6 : f32
    %65 = arith.addf %64, %cst_7 : f32
    %66 = math.rsqrt %65 : f32
    %67 = arith.mulf %10, %66 : f32
    %68 = vector.broadcast %67 : f32 to vector<2x14x14xf32>
    %69 = arith.mulf %58, %68 : vector<2x14x14xf32>
    %70 = vector.broadcast %11 : f32 to vector<2x14x14xf32>
    %71 = arith.addf %69, %70 : vector<2x14x14xf32>
    %cst_8 = arith.constant 0.000000e+00 : f32
    %72 = vector.broadcast %cst_8 : f32 to vector<2x14x14xf32>
    %73 = arith.maximumf %71, %72 : vector<2x14x14xf32>
    %c0_9 = arith.constant 0 : index
    %c0_10 = arith.constant 0 : index
    %c0_11 = arith.constant 0 : index
    %74 = vector.load %arg2[%c0_9, %c0_10, %c0_11] : memref<2x14x14xf32, #tpu.memory_space<vmem>>, vector<2x14x14xf32>
    tpu.vector_store %arg2[%c0_9, %c0_10, %c0_11], %73 {strides = array<i32>} : memref<2x14x14xf32, #tpu.memory_space<vmem>>, vector<2x14x14xf32>,
    return
  }
}

</mosaic_0001>

<bundles_post_ra>
// kernel: tpu_custom_call.1
= control target key start
LH: loop header
LB: loop body
LE: loop exit
PB: predicated region body
PF: predicated region fallthrough
CT: control target
= control target key end

     0   :  { %7 = vsyncpa [#allocation3], 0  ;;  %s600_s0 = inlined_call_operand.hbm [shape: f32[2,16,16], index: 0, kind: input, shape index: {}]   ;;  %s601_s1 = inlined_call_operand.vmem [shape: f32[11], index: 1, kind: input, shape index: {}]   ;;  %s602_s2 = inlined_call_operand.vmem [shape: f32[2,14,14], index: 2, kind: output, shape index: {}]  }
   0x1   :  { %8 = vsyncpa [#allocation4], 0  ;;  %s420_s9 = smov [#allocation2]   ;;  %s27_s13 = sshll.u32 %s601_s1, 4  ;;  %s28_s13 = int_to_ptr.vmem [resolvable:$true] %s27_s13 }
   0x2   :  { %s14_s10 = sshll.u32 %s420_s9, 4  ;;  %s382_s16 = scalar_lea.hbm %s600_s0, 512  ;;  %s15_s10 = int_to_ptr.vmem [resolvable:$true] %s14_s10 }
   0x3   :  { %p383_p0 = scmp.ne.s32.totalorder %s600_s0, %s382_s16  ;;  %p386_p1 = scmp.lt.u32.totalorder %s382_s16, %s600_s0 }
   0x5   :  { %p388_p2 = pnand %p386_p1, %p383_p0 }
   0x7   :  { %391 = shalt.err (!%p388_p2)
}
   0x8   :  { %s392_s21 = scalar_lea.vmem %s15_s10, 512  ;;  %p397_p4 = scmp.lt.s32.totalorder %s15_s10, %s15_s10 }
   0x9   :  { %p393_p3 = scmp.ne.s32.totalorder %s15_s10, %s392_s21  ;;  %p398_p5 = scmp.lt.s32.totalorder %s392_s21, %s392_s21 }
   0xb   :  { %p399_p6 = por %p398_p5, %p397_p4 }
   0xd   :  { %p400_p7 = pnand %p399_p6, %p393_p3 }
   0xf   :  { %403 = shalt.err (!%p400_p7)
}
  0x10   :  { %s421_s1 = smov 128   ;;  %s422_s22 = smov 8  }
  0x11   :  { %20 = dma.hbm_to_vmem [thread:$0]  %s600_s0, 512, %s15_s10, [#allocation3], %s421_s1, %s421_s1, %s422_s22  }
  0x12   :  { %s404_s25 = scalar_lea.vmem %s28_s13, 16  ;;  %p409_p9 = scmp.lt.s32.totalorder %s28_s13, %s28_s13 }
  0x13   :  { %p405_p8 = scmp.ne.s32.totalorder %s28_s13, %s404_s25  ;;  %p410_p10 = scmp.lt.s32.totalorder %s404_s25, %s404_s25 }
  0x15   :  { %p411_p11 = por %p410_p10, %p409_p9 }
  0x17   :  { %p412_p12 = pnand %p411_p11, %p405_p8 }
  0x19   :  { %415 = shalt.err (!%p412_p12)
}
  0x1a   :  { %s423_s26 = smov [#allocation5]  }
  0x1b   :  { %30 = dma.vmem_to_smem %s28_s13, 16, %s423_s26, [#allocation4]  }
  0x1c   :  { %416 = dma.done.wait [#allocation3], 512  }
  0x1d   :  { %417 = vsyncadd [#allocation3], 4294966784 }
  0x1e   :  { %418 = dma.done.wait [#allocation4], 16  }
  0x1f   :  { %419 = vsyncadd [#allocation4], 4294967280 }
  0x20   :  { %37 = sfence }
  0x21   :  { %s358_s27 = sld [smem:[#allocation5 + $0x1]]  ;;  %s359_s28 = sld [smem:[#allocation5 + $0x2]]  ;;  %v456_v0 = vld [vmem:[#allocation2 + $0x10] sm:$0xff]  ;;  %v458_v1 = vld [vmem:[#allocation2] sm:$0xff]  ;;  %v460_v3 = vld [vmem:[#allocation2 + $0x8] sm:$0xff]  ;;  %vm121_vm0 = vcmask 1046528  }
  0x22   :  { %s361_s29 = sld [smem:[#allocation5 + $0x4]]  ;;  %s362_s0 = sld [smem:[#allocation5 + $0x5]]  ;;  %v468_v9 = vld [vmem:[#allocation2 + $0x18] sm:$0xff]  ;;  %vm207_vm1 = vcmask 1045504   ;;  %vm286_vm2 = vcmask 111616   ;;  %vm284_vm3 = vcmask 113664  }
  0x23   :  { %s424_s30 = smov 127   ;;  %s425_s3 = smov 126  }
  0x24   :  { %s360_s4 = sld [smem:[#allocation5 + $0x3]]  ;;  %s363_s5 = sld [smem:[#allocation5 + $0x6]] }
  0x25   :  { %s364_s6 = sld [smem:[#allocation5 + $0x7]]  ;;  %s487_s7 = sld [smem:[#allocation5 + $0x8]] }
  0x26   :  { %s42_s8 = sld [smem:[#allocation5]]  ;;  %s366_s14 = sld [smem:[#allocation5 + $0x9]] }
  0x27   :  { %v62_v2 = vstv %s358_s27  ;;  %v87_v6 = vstv %s359_s28  ;;  %s367_s15 = sld [smem:[#allocation5 + $0xa]] }
  0x28   :  { %v65_v4 = vmul.f32 %v62_v2, %v456_v0  ;;  %v63_v5 = vmul.f32 %v62_v2, %v458_v1  ;;  %v88_v7 = vmul.f32 %v87_v6, %v458_v1  ;;  %v64_v8 = vmul.f32 %v62_v2, %v460_v3 }
  0x29   :  { %v136_v10 = vstv %s361_s29  ;;  %v66_v11 = vmul.f32 %v62_v2, %v468_v9  ;;  %v167_v12 = vstv %s362_s0  ;;  %v89_v13 = vmul.f32 %v87_v6, %v460_v3 }
  0x2a   :  { %75 = vrot.lane.b32.xlu1 %v65_v4, %s424_s30  ;;  %71 = vrot.lane.b32.xlu0 %v63_v5, %s424_s30  ;;  %v138_v14 = vmul.f32 %v136_v10, %v460_v3  ;;  %v137_v15 = vmul.f32 %v136_v10, %v458_v1  ;;  %v168_v16 = vmul.f32 %v167_v12, %v458_v1  ;;  %v112_v29 = vstv %s360_s4 }
  0x2b   :  { %v169_v17 = vmul.f32 %v167_v12, %v460_v3  ;;  %v91_v18 = vmul.f32 %v87_v6, %v468_v9  ;;  %v90_v19 = vmul.f32 %v87_v6, %v456_v0  ;;  %v139_v22 = vmul.f32 %v136_v10, %v456_v0 }
  0x2c   :  { %v146_v20 = vrot.slane %v138_v14, 1  ;;  %v145_v21 = vrot.slane %v137_v15, 1  ;;  %v140_v23 = vmul.f32 %v136_v10, %v468_v9  ;;  %v176_v24 = vrot.slane %v168_v16, 1 }
  0x2d   :  { %v177_v25 = vrot.slane %v169_v17, 1  ;;  %v148_v27 = vrot.slane %v139_v22, 1  ;;  %v490_v30 = vmul.f32 %v112_v29, %v460_v3  ;;  %v113_v31 = vmul.f32 %v112_v29, %v458_v1 }
  0x2e   :  { %96 = vrot.lane.b32.xlu1 %v88_v7, %s425_s3  ;;  %73 = vrot.lane.b32.xlu0 %v64_v8, %s424_s30  ;;  %v147_v26 = vsel %vm121_vm0, %v145_v21, %v146_v20  ;;  %v149_v28 = vrot.slane %v140_v23, 1  ;;  %v115_v32 = vmul.f32 %v112_v29, %v456_v0  ;;  %v495_v33 = vmul.f32 %v112_v29, %v468_v9 }
  0x2f   :  { %v178_v34 = vsel %vm121_vm0, %v176_v24, %v177_v25  ;;  %v171_v35 = vmul.f32 %v167_v12, %v468_v9  ;;  %v170_v36 = vmul.f32 %v167_v12, %v456_v0  ;;  %v198_v37 = vstv %s363_s5 }
  0x30   :  { %v123_v38 = vrot.slane %v490_v30, 1  ;;  %v122_v39 = vrot.slane %v113_v31, 1  ;;  %v125_v40 = vrot.slane %v115_v32, 1  ;;  %v126_v41 = vrot.slane %v495_v33, 1 }
  0x31   :  { %v505_v42 = vmul.f32 %v198_v37, %v460_v3  ;;  %v199_v43 = vmul.f32 %v198_v37, %v458_v1  ;;  %v201_v44 = vmul.f32 %v198_v37, %v456_v0  ;;  %v150_v45 = vsel %vm121_vm0, %v148_v27, %v149_v28 }
  0x32   :  { %77 = vrot.lane.b32.xlu1 %v66_v11, %s424_s30  ;;  %98 = vrot.lane.b32.xlu0 %v89_v13, %s425_s3  ;;  %v124_v46 = vsel %vm121_vm0, %v122_v39, %v123_v38  ;;  %v516_v47 = vsel %vm121_vm0, %v125_v40, %v126_v41  ;;  %v519_v48 = vmul.f32 %v198_v37, %v468_v9  ;;  %v222_v49 = vstv %s364_s6 }
  0x33   :  { %v209_v50 = vrot.slane %v505_v42, 2  ;;  %v208_v51 = vrot.slane %v199_v43, 2  ;;  %v211_v52 = vrot.slane %v201_v44, 2  ;;  %v180_v54 = vrot.slane %v171_v35, 1 }
  0x34   :  { %v212_v53 = vrot.slane %v519_v48, 2  ;;  %v179_v55 = vrot.slane %v170_v36, 1  ;;  %v224_v57 = vmul.f32 %v222_v49, %v460_v3  ;;  %v223_v58 = vmul.f32 %v222_v49, %v458_v1 }
  0x35   :  { %v528_v56 = vsel %vm207_vm1, %v208_v51, %v209_v50  ;;  %v253_v59 = vstv %s487_s7  ;;  %v225_v5 = vmul.f32 %v222_v49, %v456_v0  ;;  %v226_v6 = vmul.f32 %v222_v49, %v468_v9 }
  0x36   :  { %102 = vrot.lane.b32.xlu1 %v91_v18, %s425_s3  ;;  %100 = vrot.lane.b32.xlu0 %v90_v19, %s425_s3  ;;  %v536_v60 = vsel %vm207_vm1, %v211_v52, %v212_v53  ;;  %v181_v61 = vsel %vm121_vm0, %v179_v55, %v180_v54  ;;  %v254_v62 = vmul.f32 %v253_v59, %v458_v1  ;;  %v232_v2 = vrot.slane %v224_v57, 2 }
  0x37   :  { %v255_v63 = vmul.f32 %v253_v59, %v460_v3  ;;  %v231_v4 = vrot.slane %v223_v58, 2  ;;  %v234_v11 = vrot.slane %v225_v5, 2  ;;  %v235_v12 = vrot.slane %v226_v6, 2 }
  0x38   :  { %v262_v7 = vrot.slane %v254_v62, 2  ;;  %v257_v15 = vmul.f32 %v253_v59, %v468_v9  ;;  %v256_v16 = vmul.f32 %v253_v59, %v456_v0 }
  0x39   :  { %v233_v8 = vsel %vm207_vm1, %v231_v4, %v232_v2  ;;  %v263_v10 = vrot.slane %v255_v63, 2  ;;  %v236_v14 = vsel %vm207_vm1, %v234_v11, %v235_v12 }
  0x3a   :  { %153 = vrot.lane.b32.xlu1 %v146_v20, %s424_s30  ;;  %151 = vrot.lane.b32.xlu0 %v147_v26, %s424_s30  ;;  %v266_v17 = vrot.slane %v257_v15, 2  ;;  %v265_v18 = vrot.slane %v256_v16, 2  ;;  %v53_v20 = vstv %s42_s8 }
  0x3b   :  { %v264_v13 = vsel %vm207_vm1, %v262_v7, %v263_v10  ;;  %v54_v21 = vmul.f32 %v53_v20, %v458_v1  ;;  %v55_v1 = vmul.f32 %v53_v20, %v460_v3  ;;  %v57_v51 = vmul.f32 %v53_v20, %v468_v9 }
  0x3c   :  { %v267_v19 = vsel %vm207_vm1, %v265_v18, %v266_v17 }
  0x3e   :  { %182 = vrot.lane.b32.xlu1 %v178_v34, %s425_s3  ;;  %155 = vrot.lane.b32.xlu0 %v150_v45, %s424_s30 }
  0x42   :  { %157 = vrot.lane.b32.xlu1 %v149_v28, %s424_s30  ;;  %184 = vrot.lane.b32.xlu0 %v177_v25, %s425_s3  ;;  %v56_v28 = vmul.f32 %v53_v20, %v456_v0 }
  0x46   :  { %188 = vrot.lane.b32.xlu1 %v180_v54, %s425_s3  ;;  %186 = vrot.lane.b32.xlu0 %v181_v61, %s425_s3 }
  0x4a   :  { %239 = vrot.lane.b32.xlu1 %v232_v2, %s424_s30  ;;  %237 = vrot.lane.b32.xlu0 %v233_v8, %s424_s30 }
  0x4e   :  { %268 = vrot.lane.b32.xlu1 %v264_v13, %s425_s3  ;;  %241 = vrot.lane.b32.xlu0 %v236_v14, %s424_s30 }
  0x52   :  { %243 = vrot.lane.b32.xlu1 %v235_v12, %s424_s30  ;;  %270 = vrot.lane.b32.xlu0 %v263_v10, %s425_s3 }
  0x56   :  { %274 = vrot.lane.b32.xlu1 %v266_v17, %s425_s3  ;;  %272 = vrot.lane.b32.xlu0 %v267_v19, %s425_s3 }
  0x9c   :  { %v76_v22 = vpop.permute.xlu1 %75  ;;  %v72_v23 = vpop.permute.xlu0 %71 }
  0x9d   :  { %v83_v24 = vadd.f32 %v72_v23, %v54_v21  ;;  %v85_v34 = vadd.f32 %v76_v22, %v56_v28 }
  0xa0   :  { %v97_v25 = vpop.permute.xlu1 %96  ;;  %v74_v26 = vpop.permute.xlu0 %73 }
  0xa1   :  { %v108_v27 = vadd.f32 %v97_v25, %v83_v24  ;;  %v84_v0 = vadd.f32 %v74_v26, %v55_v1 }
  0xa3   :  { %v132_v29 = vadd.f32 %v124_v46, %v108_v27 }
  0xa4   :  { %v78_v31 = vpop.permute.xlu1 %77  ;;  %v99_v32 = vpop.permute.xlu0 %98 }
  0xa5   :  { %v86_v57 = vadd.f32 %v78_v31, %v57_v51  ;;  %v109_v58 = vadd.f32 %v99_v32, %v84_v0 }
  0xa7   :  { %v133_v3 = vadd.f32 %v123_v38, %v109_v58 }
  0xa8   :  { %v103_v35 = vpop.permute.xlu1 %102  ;;  %v101_v36 = vpop.permute.xlu0 %100 }
  0xa9   :  { %v110_v37 = vadd.f32 %v101_v36, %v85_v34  ;;  %v111_v62 = vadd.f32 %v103_v35, %v86_v57 }
  0xab   :  { %v134_v39 = vadd.f32 %v516_v47, %v110_v37 }
  0xac   :  { %v154_v40 = vpop.permute.xlu1 %153  ;;  %v152_v43 = vpop.permute.xlu0 %151 }
  0xad   :  { %v163_v44 = vadd.f32 %v152_v43, %v132_v29  ;;  %v164_v2 = vadd.f32 %v154_v40, %v133_v3 }
  0xb0   :  { %v183_v45 = vpop.permute.xlu1 %182  ;;  %v156_v49 = vpop.permute.xlu0 %155 }
  0xb1   :  { %v194_v52 = vadd.f32 %v183_v45, %v163_v44  ;;  %v165_v59 = vadd.f32 %v156_v49, %v134_v39 }
  0xb3   :  { %v218_v46 = vadd.f32 %v528_v56, %v194_v52  ;;  %v135_v56 = vadd.f32 %v126_v41, %v111_v62 }
  0xb4   :  { %v158_v54 = vpop.permute.xlu1 %157  ;;  %v185_v55 = vpop.permute.xlu0 %184 }
  0xb5   :  { %v195_v6 = vadd.f32 %v185_v55, %v164_v2  ;;  %v166_v7 = vadd.f32 %v158_v54, %v135_v56  ;;  %v339_v2 = vstv %s367_s15 }
  0xb7   :  { %v219_v12 = vadd.f32 %v209_v50, %v195_v6 }
  0xb8   :  { %v189_v61 = vpop.permute.xlu1 %188  ;;  %v187_v47 = vpop.permute.xlu0 %186 }
  0xb9   :  { %v196_v63 = vadd.f32 %v187_v47, %v165_v59  ;;  %v197_v11 = vadd.f32 %v189_v61, %v166_v7 }
  0xbb   :  { %v220_v4 = vadd.f32 %v536_v60, %v196_v63  ;;  %v221_v60 = vadd.f32 %v212_v53, %v197_v11 }
  0xbc   :  { %v240_v9 = vpop.permute.xlu1 %239  ;;  %v238_v5 = vpop.permute.xlu0 %237 }
  0xbd   :  { %v250_v13 = vadd.f32 %v240_v9, %v219_v12  ;;  %v249_v30 = vadd.f32 %v238_v5, %v218_v46 }
  0xc0   :  { %v269_v8 = vpop.permute.xlu1 %268  ;;  %v242_v10 = vpop.permute.xlu0 %241 }
  0xc1   :  { %v280_v15 = vadd.f32 %v269_v8, %v249_v30  ;;  %v251_v33 = vadd.f32 %v242_v10, %v220_v4 }
  0xc3   :  { %v285_v42 = vsel %vm284_vm3, %v280_v15, 0.0 }
  0xc4   :  { %v244_v38 = vpop.permute.xlu1 %243  ;;  %v271_v14 = vpop.permute.xlu0 %270 }
  0xc5   :  { %v281_v16 = vadd.f32 %v271_v14, %v250_v13  ;;  %v252_v41 = vadd.f32 %v244_v38, %v221_v60 }
  0xc7   :  { %v287_v17 = vsel %vm286_vm2, %v281_v16, 0.0 }
  0xc8   :  { %v275_v18 = vpop.permute.xlu1 %274  ;;  %v273_v19 = vpop.permute.xlu0 %272  ;;  %v288_v21 = vadd.f32 %v287_v17, %v285_v42 }
  0xc9   :  { %v283_v50 = vadd.f32 %v275_v18, %v252_v41  ;;  %v282_v20 = vadd.f32 %v273_v19, %v251_v33 }
  0xcb   :  { %v289_v22 = vsel %vm284_vm3, %v282_v20, 0.0  ;;  %v291_v24 = vsel %vm286_vm2, %v283_v50, 0.0 }
  0xcc   :  { %v290_v23 = vadd.f32 %v289_v22, %v288_v21 }
  0xce   :  { %v292_v48 = vadd.f32 %v291_v24, %v290_v23 }
  0xd0   :  { %293 = vadd.xlane.f32.xlu0 %v292_v48 }
 0x15d   :  { %v294_v53 = vpop.xlane.xlu0 %293 }
 0x15e   :  { %v295_v25 = vrot.slane %v294_v53, 4 }
 0x160   :  { %v296_v26 = vadd.f32 %v295_v25, %v294_v53 }
 0x162   :  { %v297_v27 = vrot.slane %v296_v26, 2 }
 0x164   :  { %v298_v28 = vadd.f32 %v297_v27, %v296_v26 }
 0x166   :  { %v299_v29 = vrot.slane %v298_v28, 1 }
 0x168   :  { %v300_v31 = vadd.f32 %v299_v29, %v298_v28 }
 0x16a   :  { %368 = vpush %v300_v31 }
 0x19b   :  { %s369_s9 = spop %368 }
 0x19c   :  { %s302_s10 = smul.f32 0.0025510204, %s369_s9 }
 0x19e   :  { %v303_v32 = vstv %s302_s10 }
 0x19f   :  { %v304_v34 = vsub.f32 %v280_v15, %v303_v32  ;;  %v305_v35 = vsub.f32 %v281_v16, %v303_v32  ;;  %v306_v36 = vsub.f32 %v282_v20, %v303_v32  ;;  %v307_v37 = vsub.f32 %v283_v50, %v303_v32 }
 0x1a1   :  { %v308_v39 = vmul.f32 %v304_v34, %v304_v34  ;;  %v309_v40 = vmul.f32 %v305_v35, %v305_v35  ;;  %v310_v43 = vmul.f32 %v306_v36, %v306_v36  ;;  %v311_v1 = vmul.f32 %v307_v37, %v307_v37 }
 0x1a3   :  { %v312_v44 = vsel %vm284_vm3, %v308_v39, 0.0  ;;  %v313_v45 = vsel %vm286_vm2, %v309_v40, 0.0  ;;  %v315_v51 = vsel %vm284_vm3, %v310_v43, 0.0  ;;  %v317_v0 = vsel %vm286_vm2, %v311_v1, 0.0 }
 0x1a4   :  { %v314_v49 = vadd.f32 %v313_v45, %v312_v44 }
 0x1a6   :  { %v316_v52 = vadd.f32 %v315_v51, %v314_v49 }
 0x1a8   :  { %v318_v46 = vadd.f32 %v317_v0, %v316_v52 }
 0x1aa   :  { %319 = vadd.xlane.f32.xlu1 %v318_v46 }
 0x237   :  { %v320_v54 = vpop.xlane.xlu1 %319 }
 0x238   :  { %v321_v55 = vrot.slane %v320_v54, 4 }
 0x23a   :  { %v322_v57 = vadd.f32 %v321_v55, %v320_v54 }
 0x23c   :  { %v323_v58 = vrot.slane %v322_v57, 2 }
 0x23e   :  { %v324_v59 = vadd.f32 %v323_v58, %v322_v57 }
 0x240   :  { %v325_v61 = vrot.slane %v324_v59, 1 }
 0x242   :  { %v326_v47 = vadd.f32 %v325_v61, %v324_v59 }
 0x244   :  { %370 = vpush %v326_v47 }
 0x275   :  { %s371_s11 = spop %370 }
 0x276   :  { %s328_s12 = smul.f32 0.0025510204, %s371_s11 }
 0x278   :  { %s329_s13 = sadd.f32 1e-05, %s328_s12 }
 0x27a   :  { %v330_v62 = vstv %s329_s13 }
 0x27b   :  { %380 = vrsqrt.f32 %v330_v62 }
 0x285   :  { %v381_v3 = vpop.eup %380 }
 0x286   :  { %372 = vpush %v381_v3 }
 0x2b7   :  { %s373_s16 = spop %372 }
 0x2b8   :  { %s333_s17 = smul.f32 %s373_s16, %s366_s14 }
 0x2ba   :  { %v334_v63 = vstv %s333_s17 }
 0x2bb   :  { %v335_v4 = vmul.f32 %v334_v63, %v304_v34  ;;  %v336_v9 = vmul.f32 %v334_v63, %v305_v35  ;;  %v337_v5 = vmul.f32 %v334_v63, %v306_v36  ;;  %v338_v56 = vmul.f32 %v334_v63, %v307_v37 }
 0x2bd   :  { %v340_v6 = vadd.f32 %v339_v2, %v335_v4  ;;  %v341_v7 = vadd.f32 %v339_v2, %v336_v9  ;;  %v342_v8 = vadd.f32 %v339_v2, %v337_v5  ;;  %v343_v10 = vadd.f32 %v339_v2, %v338_v56 }
 0x2bf   :  { %v344_v11 = vmax.f32 %v340_v6, 0.0  ;;  %v345_v12 = vmax.f32 %v341_v7, 0.0  ;;  %v346_v13 = vmax.f32 %v342_v8, 0.0  ;;  %v347_v30 = vmax.f32 %v343_v10, 0.0 }
 0x2c1   :  { %348 = vst.msk [vmem:[%s602_s2] sm:$0xff] %vm284_vm3, %v344_v11  ;;  %350 = vst.msk [vmem:[%s602_s2 + $0x10] sm:$0xff] %vm284_vm3, %v346_v13 }
 0x2c2   :  { %349 = vst.msk [vmem:[%s602_s2 + $0x8] sm:$0x3f] %vm286_vm2, %v345_v12  ;;  %351 = vst.msk [vmem:[%s602_s2 + $0x18] sm:$0x3f] %vm286_vm2, %v347_v30 }
 0x2c3   :  { %356 = vsyncpa [#allocation3], 1 }
 0x2c4   :  { %357 = vsyncpa [#allocation4], 1 }

</bundles_post_ra>
